<compile_context>
chip_gen: v5e
topology: v5e:2x2
jax: 0.10.0
libtpu: 0.0.40
codegen_flags: <defaults>
</compile_context>

<pallas_src>
import jax
import jax.numpy as jnp
from jax import lax
from jax.experimental import pallas as pl
from jax.experimental.pallas import tpu as pltpu


LANE = 128  # TPU lane width: pad last dims to this for lane-dense loads/stores & MXU fill.


def _round_up(n, m):
    return ((n + m - 1) // m) * m


def rnn_fused_kernel(xids_ref, h0_ref, wxh_ref, whh_ref, who_ref, bh_ref, bo_ref,
                     y_ref, h_last_ref, h_all):
    """Fused RNN forward: one-hot embedding + recurrence + output projection.

    xids_ref  : (seq, batch, 1) int32 token ids (seq-major).
    h0_ref    : (batch, HP)  f32 initial hidden state (lane-padded).
    wxh_ref   : (VP, HP) f32, whh_ref: (HP, HP) f32, who_ref: (HP, VP) f32 (lane-padded).
    bh_ref    : (1, HP) f32, bo_ref: (1, VP) f32 (lane-padded).
    y_ref     : (seq*batch, VP) f32 output logits (flattened rows, lane-dense store).
    h_last_ref: (batch, HP) f32 final hidden state.
    h_all     : VMEM scratch (seq, batch, HP) f32 for per-step hidden states.
    """
    seq = xids_ref.shape[0]
    batch = xids_ref.shape[1]
    vp = wxh_ref.shape[0]
    hp = whh_ref.shape[0]

    # Hoist weight / bias loads out of the unrolled loop: single vld each, held in vregs.
    wxh = wxh_ref[...]
    whh = whh_ref[...]
    bh = bh_ref[...]
    lane_iota = lax.broadcasted_iota(jnp.int32, (batch, vp), 1)

    def step(t, h):
        ids_t = xids_ref[t]                                     # (batch, 1) int32
        onehot = (ids_t == lane_iota).astype(jnp.float32)       # (batch, VP) one-hot row
        # x_t @ w_xh + b_h  as a tiny MXU matmul (padded rows/cols of wxh are zero).
        xproj = jnp.dot(onehot, wxh, preferred_element_type=jnp.float32) + bh
        h_new = jnp.tanh(
            jnp.dot(h, whh, preferred_element_type=jnp.float32) + xproj)
        h_all[t] = h_new
        return h_new

    # Short fixed trip count -> fully unroll for LLO scheduler visibility; gate unrolling so
    # long sequences don't blow up trace/compile time.
    h_final = lax.fori_loop(0, seq, step, h0_ref[...], unroll=(seq <= 32))
    h_last_ref[...] = h_final

    # Epilogue (fused output projection): one large lane-dense matmul + bias.
    # (seq, batch, HP) -> (seq*batch, HP) is a sublane-aligned collapse when batch % 8 == 0.
    h2d = h_all[...].reshape(seq * batch, hp)
    y_ref[...] = (
        jnp.dot(h2d, who_ref[...], preferred_element_type=jnp.float32) + bo_ref[...]
    )


def rnn_forward(X_ids, H0, w_xh, w_hh, w_ho, b_h, b_o, vocab_size):
    """X_ids: (batch, seq) int32 token ids; H0: (batch, hidden) f32.

    Returns (Y, (H,)) with Y: (seq, batch, vocab) f32, H: (batch, hidden) f32,
    matching the PyTorch module's forward semantics exactly.
    """
    batch, seq = X_ids.shape
    hidden = w_hh.shape[0]
    hp = _round_up(hidden, LANE)       # lane-padded hidden
    vp = _round_up(vocab_size, LANE)   # lane-padded vocab

    def pad2(a, rows, cols):
        a = a.astype(jnp.float32)
        return jnp.zeros((rows, cols), jnp.float32).at[: a.shape[0], : a.shape[1]].set(a)

    # Zero padding keeps the extra hidden columns exactly 0 through tanh (tanh(0)=0),
    # and the extra vocab columns contribute nothing; we slice them off afterwards.
    wxh_p = pad2(w_xh, vp, hp)
    whh_p = pad2(w_hh, hp, hp)
    who_p = pad2(w_ho, hp, vp)
    bh_p = pad2(b_h.reshape(1, -1), 1, hp)
    bo_p = pad2(b_o.reshape(1, -1), 1, vp)
    h0_p = pad2(H0, batch, hp)

    # Seq-major token ids, shaped (seq, batch, 1) so each step reads a (batch, 1) row.
    xids = X_ids.T.reshape(seq, batch, 1).astype(jnp.int32)

    # TODO(synk): for large batch on v7x, add a leading "parallel" grid axis over batch blocks
    #             (and stream X over a seq grid when seq*batch*hp outgrows scoped VMEM).
    y2d, h_last = pl.pallas_call(
        rnn_fused_kernel,
        out_shape=(
            jax.ShapeDtypeStruct((seq * batch, vp), jnp.float32),
            jax.ShapeDtypeStruct((batch, hp), jnp.float32),
        ),
        grid_spec=pltpu.PrefetchScalarGridSpec(
            num_scalar_prefetch=0,
            grid=(1,),
            in_specs=[
                pl.BlockSpec((seq, batch, 1), lambda i: (0, 0, 0)),   # token ids
                pl.BlockSpec((batch, hp), lambda i: (0, 0)),          # H0
                pl.BlockSpec((vp, hp), lambda i: (0, 0)),             # w_xh
                pl.BlockSpec((hp, hp), lambda i: (0, 0)),             # w_hh
                pl.BlockSpec((hp, vp), lambda i: (0, 0)),             # w_ho
                pl.BlockSpec((1, hp), lambda i: (0, 0)),              # b_h
                pl.BlockSpec((1, vp), lambda i: (0, 0)),              # b_o
            ],
            out_specs=[
                pl.BlockSpec((seq * batch, vp), lambda i: (0, 0)),    # Y (flattened rows)
                pl.BlockSpec((batch, hp), lambda i: (0, 0)),          # final H
            ],
            scratch_shapes=[
                pltpu.VMEM((seq, batch, hp), jnp.float32),            # per-step hidden states
            ],
        ),
        compiler_params=pltpu.CompilerParams(
            dimension_semantics=("arbitrary",),  # single sequential grid step
        ),
    )(xids, h0_p, wxh_p, whh_p, who_p, bh_p, bo_p)

    Y = y2d.reshape(seq, batch, vp)[:, :, :vocab_size]
    H = h_last[:, :hidden]
    return Y, (H,)


def rnn_forward_ref(X_ids, H0, w_xh, w_hh, w_ho, b_h, b_o, vocab_size):
    """Pure-JAX reference mirroring the PyTorch loop."""
    X_oh = jax.nn.one_hot(X_ids.T, vocab_size, dtype=jnp.float32)

    def step(H, x):
        H = jnp.tanh(H @ w_hh + x @ w_xh + b_h)
        y = H @ w_ho + b_o
        return H, y

    H, Ys = jax.lax.scan(step, H0, X_oh)
    return Ys, (H,)


if __name__ == "__main__":
    # Small shapes consistent with the module.
    vocab_size = 32
    num_hiddens = 32
    batch_size = 8
    seq_len = 8

    key = jax.random.PRNGKey(0)
    k1, k2, k3, k4 = jax.random.split(key, 4)

    # Deterministic parameter init: randn * 0.01, zeros for biases (as in __init__).
    w_xh = (jax.random.normal(k1, (vocab_size, num_hiddens)) * 0.01).astype(jnp.float32)
    w_hh = (jax.random.normal(k2, (num_hiddens, num_hiddens)) * 0.01).astype(jnp.float32)
    w_ho = (jax.random.normal(k3, (num_hiddens, vocab_size)) * 0.01).astype(jnp.float32)
    b_h = jnp.zeros((num_hiddens,), jnp.float32)
    b_o = jnp.zeros((vocab_size,), jnp.float32)

    # Token ids (batch, seq) and init_status hidden state (zeros).
    X_ids = jax.random.randint(k4, (batch_size, seq_len), 0, vocab_size, dtype=jnp.int32)
    H0 = jnp.zeros((batch_size, num_hiddens), jnp.float32)

    Y, (H,) = rnn_forward(X_ids, H0, w_xh, w_hh, w_ho, b_h, b_o, vocab_size)
    Y = jax.block_until_ready(Y)
    H = jax.block_until_ready(H)

    # Correctness check against pure-JAX reference of the PyTorch loop.
    Y_ref, (H_ref,) = rnn_forward_ref(X_ids, H0, w_xh, w_hh, w_ho, b_h, b_o, vocab_size)
    assert Y.shape == (seq_len, batch_size, vocab_size)
    assert H.shape == (batch_size, num_hiddens)
    assert jnp.allclose(Y, Y_ref, atol=1e-5, rtol=1e-5)
    assert jnp.allclose(H, H_ref, atol=1e-5, rtol=1e-5)

    # TODO(synk): grid_clip (gradient clipping) is a training-time utility, not part of forward.
    print("KERNEL_OK")
</pallas_src>

<mosaic_0001>
module attributes {stable_mosaic.version = 11 : i64} {
  func.func @rnn_fused_kernel(%arg0: i32, %arg1: memref<8x8x1xi32, #tpu.memory_space<vmem>>, %arg2: memref<8x128xf32, #tpu.memory_space<vmem>>, %arg3: memref<128x128xf32, #tpu.memory_space<vmem>>, %arg4: memref<128x128xf32, #tpu.memory_space<vmem>>, %arg5: memref<128x128xf32, #tpu.memory_space<vmem>>, %arg6: memref<1x128xf32, #tpu.memory_space<vmem>>, %arg7: memref<1x128xf32, #tpu.memory_space<vmem>>, %arg8: memref<64x128xf32, #tpu.memory_space<vmem>>, %arg9: memref<8x128xf32, #tpu.memory_space<vmem>>, %arg10: memref<8x8x128xf32, #tpu.memory_space<vmem>>) attributes {dimension_semantics = [#tpu.dimension_semantics<arbitrary>], iteration_bounds = array<i64: 1>, scalar_prefetch = 0 : i64, scratch_operands = 1 : i64, tpu.core_type = #tpu.core_type<tc>, window_params = [{pipeline_mode = #tpu.pipeline_mode<synchronous>, transform_indices = @transform_0, window_bounds = array<i64: 8, 8, 1>}, {pipeline_mode = #tpu.pipeline_mode<synchronous>, transform_indices = @transform_1, window_bounds = array<i64: 8, 128>}, {pipeline_mode = #tpu.pipeline_mode<synchronous>, transform_indices = @transform_2, window_bounds = array<i64: 128, 128>}, {pipeline_mode = #tpu.pipeline_mode<synchronous>, transform_indices = @transform_3, window_bounds = array<i64: 128, 128>}, {pipeline_mode = #tpu.pipeline_mode<synchronous>, transform_indices = @transform_4, window_bounds = array<i64: 128, 128>}, {pipeline_mode = #tpu.pipeline_mode<synchronous>, transform_indices = @transform_5, window_bounds = array<i64: 1, 128>}, {pipeline_mode = #tpu.pipeline_mode<synchronous>, transform_indices = @transform_6, window_bounds = array<i64: 1, 128>}, {pipeline_mode = #tpu.pipeline_mode<synchronous>, transform_indices = @transform_7, window_bounds = array<i64: 64, 128>}, {pipeline_mode = #tpu.pipeline_mode<synchronous>, transform_indices = @transform_8, window_bounds = array<i64: 8, 128>}]} {
    %c0 = arith.constant 0 : index
    %c0_0 = arith.constant 0 : index
    %0 = vector.load %arg3[%c0, %c0_0] : memref<128x128xf32, #tpu.memory_space<vmem>>, vector<128x128xf32>
    %c0_1 = arith.constant 0 : index
    %c0_2 = arith.constant 0 : index
    %1 = vector.load %arg4[%c0_1, %c0_2] : memref<128x128xf32, #tpu.memory_space<vmem>>, vector<128x128xf32>
    %c0_3 = arith.constant 0 : index
    %c0_4 = arith.constant 0 : index
    %2 = vector.load %arg6[%c0_3, %c0_4] : memref<1x128xf32, #tpu.memory_space<vmem>>, vector<1x128xf32>
    %3 = tpu.iota {dimensions = array<i32: 1>} : vector<8x128xi32>
    %c0_5 = arith.constant 0 : index
    %c0_6 = arith.constant 0 : index
    %4 = vector.load %arg2[%c0_5, %c0_6] : memref<8x128xf32, #tpu.memory_space<vmem>>, vector<8x128xf32>
    %c0_i32 = arith.constant 0 : i32
    %5 = arith.index_cast %c0_i32 : i32 to index
    %c0_7 = arith.constant 0 : index
    %c0_8 = arith.constant 0 : index
    %6 = vector.load %arg1[%5, %c0_7, %c0_8] : memref<8x8x1xi32, #tpu.memory_space<vmem>>, vector<1x8x1xi32>
    %7 = vector.shape_cast %6 : vector<1x8x1xi32> to vector<8x1xi32>
    %8 = vector.broadcast %7 : vector<8x1xi32> to vector<8x128xi32>
    %9 = arith.cmpi eq, %8, %3 : vector<8x128xi32>
    %10 = arith.extui %9 : vector<8x128xi1> to vector<8x128xi32>
    %11 = arith.sitofp %10 : vector<8x128xi32> to vector<8x128xf32>
    %cst = arith.constant dense<0.000000e+00> : vector<8x128xf32>
    %12 = tpu.matmul %11, %0, %cst {dimension_numbers = #tpu.dot_dimension_numbers<[1], [0], [0], [1], [0, 0, 1, 1], [], []>} : vector<8x128xf32>, vector<128x128xf32>, vector<8x128xf32> -> vector<8x128xf32>
    %13 = vector.broadcast %2 : vector<1x128xf32> to vector<8x128xf32>
    %14 = arith.addf %12, %13 : vector<8x128xf32>
    %cst_9 = arith.constant dense<0.000000e+00> : vector<8x128xf32>
    %15 = tpu.matmul %4, %1, %cst_9 {dimension_numbers = #tpu.dot_dimension_numbers<[1], [0], [0], [1], [0, 0, 1, 1], [], []>} : vector<8x128xf32>, vector<128x128xf32>, vector<8x128xf32> -> vector<8x128xf32>
    %16 = arith.addf %15, %14 : vector<8x128xf32>
    %17 = math.tanh %16 : vector<8x128xf32>
    %18 = arith.index_cast %c0_i32 : i32 to index
    %c0_10 = arith.constant 0 : index
    %c0_11 = arith.constant 0 : index
    %19 = vector.load %arg10[%18, %c0_10, %c0_11] : memref<8x8x128xf32, #tpu.memory_space<vmem>>, vector<1x8x128xf32>
    %20 = vector.shape_cast %19 : vector<1x8x128xf32> to vector<8x128xf32>
    %21 = vector.shape_cast %17 : vector<8x128xf32> to vector<1x8x128xf32>
    tpu.vector_store %arg10[%18, %c0_10, %c0_11], %21 {strides = array<i32>} : memref<8x8x128xf32, #tpu.memory_space<vmem>>, vector<1x8x128xf32>,
    %c1_i32 = arith.constant 1 : i32
    %22 = arith.index_cast %c1_i32 : i32 to index
    %c0_12 = arith.constant 0 : index
    %c0_13 = arith.constant 0 : index
    %23 = vector.load %arg1[%22, %c0_12, %c0_13] : memref<8x8x1xi32, #tpu.memory_space<vmem>>, vector<1x8x1xi32>
    %24 = vector.shape_cast %23 : vector<1x8x1xi32> to vector<8x1xi32>
    %25 = vector.broadcast %24 : vector<8x1xi32> to vector<8x128xi32>
    %26 = arith.cmpi eq, %25, %3 : vector<8x128xi32>
    %27 = arith.extui %26 : vector<8x128xi1> to vector<8x128xi32>
    %28 = arith.sitofp %27 : vector<8x128xi32> to vector<8x128xf32>
    %cst_14 = arith.constant dense<0.000000e+00> : vector<8x128xf32>
    %29 = tpu.matmul %28, %0, %cst_14 {dimension_numbers = #tpu.dot_dimension_numbers<[1], [0], [0], [1], [0, 0, 1, 1], [], []>} : vector<8x128xf32>, vector<128x128xf32>, vector<8x128xf32> -> vector<8x128xf32>
    %30 = vector.broadcast %2 : vector<1x128xf32> to vector<8x128xf32>
    %31 = arith.addf %29, %30 : vector<8x128xf32>
    %cst_15 = arith.constant dense<0.000000e+00> : vector<8x128xf32>
    %32 = tpu.matmul %17, %1, %cst_15 {dimension_numbers = #tpu.dot_dimension_numbers<[1], [0], [0], [1], [0, 0, 1, 1], [], []>} : vector<8x128xf32>, vector<128x128xf32>, vector<8x128xf32> -> vector<8x128xf32>
    %33 = arith.addf %32, %31 : vector<8x128xf32>
    %34 = math.tanh %33 : vector<8x128xf32>
    %35 = arith.index_cast %c1_i32 : i32 to index
    %c0_16 = arith.constant 0 : index
    %c0_17 = arith.constant 0 : index
    %36 = vector.load %arg10[%35, %c0_16, %c0_17] : memref<8x8x128xf32, #tpu.memory_space<vmem>>, vector<1x8x128xf32>
    %37 = vector.shape_cast %36 : vector<1x8x128xf32> to vector<8x128xf32>
    %38 = vector.shape_cast %34 : vector<8x128xf32> to vector<1x8x128xf32>
    tpu.vector_store %arg10[%35, %c0_16, %c0_17], %38 {strides = array<i32>} : memref<8x8x128xf32, #tpu.memory_space<vmem>>, vector<1x8x128xf32>,
    %c2_i32 = arith.constant 2 : i32
    %39 = arith.index_cast %c2_i32 : i32 to index
    %c0_18 = arith.constant 0 : index
    %c0_19 = arith.constant 0 : index
    %40 = vector.load %arg1[%39, %c0_18, %c0_19] : memref<8x8x1xi32, #tpu.memory_space<vmem>>, vector<1x8x1xi32>
    %41 = vector.shape_cast %40 : vector<1x8x1xi32> to vector<8x1xi32>
    %42 = vector.broadcast %41 : vector<8x1xi32> to vector<8x128xi32>
    %43 = arith.cmpi eq, %42, %3 : vector<8x128xi32>
    %44 = arith.extui %43 : vector<8x128xi1> to vector<8x128xi32>
    %45 = arith.sitofp %44 : vector<8x128xi32> to vector<8x128xf32>
    %cst_20 = arith.constant dense<0.000000e+00> : vector<8x128xf32>
    %46 = tpu.matmul %45, %0, %cst_20 {dimension_numbers = #tpu.dot_dimension_numbers<[1], [0], [0], [1], [0, 0, 1, 1], [], []>} : vector<8x128xf32>, vector<128x128xf32>, vector<8x128xf32> -> vector<8x128xf32>
    %47 = vector.broadcast %2 : vector<1x128xf32> to vector<8x128xf32>
    %48 = arith.addf %46, %47 : vector<8x128xf32>
    %cst_21 = arith.constant dense<0.000000e+00> : vector<8x128xf32>
    %49 = tpu.matmul %34, %1, %cst_21 {dimension_numbers = #tpu.dot_dimension_numbers<[1], [0], [0], [1], [0, 0, 1, 1], [], []>} : vector<8x128xf32>, vector<128x128xf32>, vector<8x128xf32> -> vector<8x128xf32>
    %50 = arith.addf %49, %48 : vector<8x128xf32>
    %51 = math.tanh %50 : vector<8x128xf32>
    %52 = arith.index_cast %c2_i32 : i32 to index
    %c0_22 = arith.constant 0 : index
    %c0_23 = arith.constant 0 : index
    %53 = vector.load %arg10[%52, %c0_22, %c0_23] : memref<8x8x128xf32, #tpu.memory_space<vmem>>, vector<1x8x128xf32>
    %54 = vector.shape_cast %53 : vector<1x8x128xf32> to vector<8x128xf32>
    %55 = vector.shape_cast %51 : vector<8x128xf32> to vector<1x8x128xf32>
    tpu.vector_store %arg10[%52, %c0_22, %c0_23], %55 {strides = array<i32>} : memref<8x8x128xf32, #tpu.memory_space<vmem>>, vector<1x8x128xf32>,
    %c3_i32 = arith.constant 3 : i32
    %56 = arith.index_cast %c3_i32 : i32 to index
    %c0_24 = arith.constant 0 : index
    %c0_25 = arith.constant 0 : index
    %57 = vector.load %arg1[%56, %c0_24, %c0_25] : memref<8x8x1xi32, #tpu.memory_space<vmem>>, vector<1x8x1xi32>
    %58 = vector.shape_cast %57 : vector<1x8x1xi32> to vector<8x1xi32>
    %59 = vector.broadcast %58 : vector<8x1xi32> to vector<8x128xi32>
    %60 = arith.cmpi eq, %59, %3 : vector<8x128xi32>
    %61 = arith.extui %60 : vector<8x128xi1> to vector<8x128xi32>
    %62 = arith.sitofp %61 : vector<8x128xi32> to vector<8x128xf32>
    %cst_26 = arith.constant dense<0.000000e+00> : vector<8x128xf32>
    %63 = tpu.matmul %62, %0, %cst_26 {dimension_numbers = #tpu.dot_dimension_numbers<[1], [0], [0], [1], [0, 0, 1, 1], [], []>} : vector<8x128xf32>, vector<128x128xf32>, vector<8x128xf32> -> vector<8x128xf32>
    %64 = vector.broadcast %2 : vector<1x128xf32> to vector<8x128xf32>
    %65 = arith.addf %63, %64 : vector<8x128xf32>
    %cst_27 = arith.constant dense<0.000000e+00> : vector<8x128xf32>
    %66 = tpu.matmul %51, %1, %cst_27 {dimension_numbers = #tpu.dot_dimension_numbers<[1], [0], [0], [1], [0, 0, 1, 1], [], []>} : vector<8x128xf32>, vector<128x128xf32>, vector<8x128xf32> -> vector<8x128xf32>
    %67 = arith.addf %66, %65 : vector<8x128xf32>
    %68 = math.tanh %67 : vector<8x128xf32>
    %69 = arith.index_cast %c3_i32 : i32 to index
    %c0_28 = arith.constant 0 : index
    %c0_29 = arith.constant 0 : index
    %70 = vector.load %arg10[%69, %c0_28, %c0_29] : memref<8x8x128xf32, #tpu.memory_space<vmem>>, vector<1x8x128xf32>
    %71 = vector.shape_cast %70 : vector<1x8x128xf32> to vector<8x128xf32>
    %72 = vector.shape_cast %68 : vector<8x128xf32> to vector<1x8x128xf32>
    tpu.vector_store %arg10[%69, %c0_28, %c0_29], %72 {strides = array<i32>} : memref<8x8x128xf32, #tpu.memory_space<vmem>>, vector<1x8x128xf32>,
    %c4_i32 = arith.constant 4 : i32
    %73 = arith.index_cast %c4_i32 : i32 to index
    %c0_30 = arith.constant 0 : index
    %c0_31 = arith.constant 0 : index
    %74 = vector.load %arg1[%73, %c0_30, %c0_31] : memref<8x8x1xi32, #tpu.memory_space<vmem>>, vector<1x8x1xi32>
    %75 = vector.shape_cast %74 : vector<1x8x1xi32> to vector<8x1xi32>
    %76 = vector.broadcast %75 : vector<8x1xi32> to vector<8x128xi32>
    %77 = arith.cmpi eq, %76, %3 : vector<8x128xi32>
    %78 = arith.extui %77 : vector<8x128xi1> to vector<8x128xi32>
    %79 = arith.sitofp %78 : vector<8x128xi32> to vector<8x128xf32>
    %cst_32 = arith.constant dense<0.000000e+00> : vector<8x128xf32>
    %80 = tpu.matmul %79, %0, %cst_32 {dimension_numbers = #tpu.dot_dimension_numbers<[1], [0], [0], [1], [0, 0, 1, 1], [], []>} : vector<8x128xf32>, vector<128x128xf32>, vector<8x128xf32> -> vector<8x128xf32>
    %81 = vector.broadcast %2 : vector<1x128xf32> to vector<8x128xf32>
    %82 = arith.addf %80, %81 : vector<8x128xf32>
    %cst_33 = arith.constant dense<0.000000e+00> : vector<8x128xf32>
    %83 = tpu.matmul %68, %1, %cst_33 {dimension_numbers = #tpu.dot_dimension_numbers<[1], [0], [0], [1], [0, 0, 1, 1], [], []>} : vector<8x128xf32>, vector<128x128xf32>, vector<8x128xf32> -> vector<8x128xf32>
    %84 = arith.addf %83, %82 : vector<8x128xf32>
    %85 = math.tanh %84 : vector<8x128xf32>
    %86 = arith.index_cast %c4_i32 : i32 to index
    %c0_34 = arith.constant 0 : index
    %c0_35 = arith.constant 0 : index
    %87 = vector.load %arg10[%86, %c0_34, %c0_35] : memref<8x8x128xf32, #tpu.memory_space<vmem>>, vector<1x8x128xf32>
    %88 = vector.shape_cast %87 : vector<1x8x128xf32> to vector<8x128xf32>
    %89 = vector.shape_cast %85 : vector<8x128xf32> to vector<1x8x128xf32>
    tpu.vector_store %arg10[%86, %c0_34, %c0_35], %89 {strides = array<i32>} : memref<8x8x128xf32, #tpu.memory_space<vmem>>, vector<1x8x128xf32>,
    %c5_i32 = arith.constant 5 : i32
    %90 = arith.index_cast %c5_i32 : i32 to index
    %c0_36 = arith.constant 0 : index
    %c0_37 = arith.constant 0 : index
    %91 = vector.load %arg1[%90, %c0_36, %c0_37] : memref<8x8x1xi32, #tpu.memory_space<vmem>>, vector<1x8x1xi32>
    %92 = vector.shape_cast %91 : vector<1x8x1xi32> to vector<8x1xi32>
    %93 = vector.broadcast %92 : vector<8x1xi32> to vector<8x128xi32>
    %94 = arith.cmpi eq, %93, %3 : vector<8x128xi32>
    %95 = arith.extui %94 : vector<8x128xi1> to vector<8x128xi32>
    %96 = arith.sitofp %95 : vector<8x128xi32> to vector<8x128xf32>
    %cst_38 = arith.constant dense<0.000000e+00> : vector<8x128xf32>
    %97 = tpu.matmul %96, %0, %cst_38 {dimension_numbers = #tpu.dot_dimension_numbers<[1], [0], [0], [1], [0, 0, 1, 1], [], []>} : vector<8x128xf32>, vector<128x128xf32>, vector<8x128xf32> -> vector<8x128xf32>
    %98 = vector.broadcast %2 : vector<1x128xf32> to vector<8x128xf32>
    %99 = arith.addf %97, %98 : vector<8x128xf32>
    %cst_39 = arith.constant dense<0.000000e+00> : vector<8x128xf32>
    %100 = tpu.matmul %85, %1, %cst_39 {dimension_numbers = #tpu.dot_dimension_numbers<[1], [0], [0], [1], [0, 0, 1, 1], [], []>} : vector<8x128xf32>, vector<128x128xf32>, vector<8x128xf32> -> vector<8x128xf32>
    %101 = arith.addf %100, %99 : vector<8x128xf32>
    %102 = math.tanh %101 : vector<8x128xf32>
    %103 = arith.index_cast %c5_i32 : i32 to index
    %c0_40 = arith.constant 0 : index
    %c0_41 = arith.constant 0 : index
    %104 = vector.load %arg10[%103, %c0_40, %c0_41] : memref<8x8x128xf32, #tpu.memory_space<vmem>>, vector<1x8x128xf32>
    %105 = vector.shape_cast %104 : vector<1x8x128xf32> to vector<8x128xf32>
    %106 = vector.shape_cast %102 : vector<8x128xf32> to vector<1x8x128xf32>
    tpu.vector_store %arg10[%103, %c0_40, %c0_41], %106 {strides = array<i32>} : memref<8x8x128xf32, #tpu.memory_space<vmem>>, vector<1x8x128xf32>,
    %c6_i32 = arith.constant 6 : i32
    %107 = arith.index_cast %c6_i32 : i32 to index
    %c0_42 = arith.constant 0 : index
    %c0_43 = arith.constant 0 : index
    %108 = vector.load %arg1[%107, %c0_42, %c0_43] : memref<8x8x1xi32, #tpu.memory_space<vmem>>, vector<1x8x1xi32>
    %109 = vector.shape_cast %108 : vector<1x8x1xi32> to vector<8x1xi32>
    %110 = vector.broadcast %109 : vector<8x1xi32> to vector<8x128xi32>
    %111 = arith.cmpi eq, %110, %3 : vector<8x128xi32>
    %112 = arith.extui %111 : vector<8x128xi1> to vector<8x128xi32>
    %113 = arith.sitofp %112 : vector<8x128xi32> to vector<8x128xf32>
    %cst_44 = arith.constant dense<0.000000e+00> : vector<8x128xf32>
    %114 = tpu.matmul %113, %0, %cst_44 {dimension_numbers = #tpu.dot_dimension_numbers<[1], [0], [0], [1], [0, 0, 1, 1], [], []>} : vector<8x128xf32>, vector<128x128xf32>, vector<8x128xf32> -> vector<8x128xf32>
    %115 = vector.broadcast %2 : vector<1x128xf32> to vector<8x128xf32>
    %116 = arith.addf %114, %115 : vector<8x128xf32>
    %cst_45 = arith.constant dense<0.000000e+00> : vector<8x128xf32>
    %117 = tpu.matmul %102, %1, %cst_45 {dimension_numbers = #tpu.dot_dimension_numbers<[1], [0], [0], [1], [0, 0, 1, 1], [], []>} : vector<8x128xf32>, vector<128x128xf32>, vector<8x128xf32> -> vector<8x128xf32>
    %118 = arith.addf %117, %116 : vector<8x128xf32>
    %119 = math.tanh %118 : vector<8x128xf32>
    %120 = arith.index_cast %c6_i32 : i32 to index
    %c0_46 = arith.constant 0 : index
    %c0_47 = arith.constant 0 : index
    %121 = vector.load %arg10[%120, %c0_46, %c0_47] : memref<8x8x128xf32, #tpu.memory_space<vmem>>, vector<1x8x128xf32>
    %122 = vector.shape_cast %121 : vector<1x8x128xf32> to vector<8x128xf32>
    %123 = vector.shape_cast %119 : vector<8x128xf32> to vector<1x8x128xf32>
    tpu.vector_store %arg10[%120, %c0_46, %c0_47], %123 {strides = array<i32>} : memref<8x8x128xf32, #tpu.memory_space<vmem>>, vector<1x8x128xf32>,
    %c7_i32 = arith.constant 7 : i32
    %124 = arith.index_cast %c7_i32 : i32 to index
    %c0_48 = arith.constant 0 : index
    %c0_49 = arith.constant 0 : index
    %125 = vector.load %arg1[%124, %c0_48, %c0_49] : memref<8x8x1xi32, #tpu.memory_space<vmem>>, vector<1x8x1xi32>
    %126 = vector.shape_cast %125 : vector<1x8x1xi32> to vector<8x1xi32>
    %127 = vector.broadcast %126 : vector<8x1xi32> to vector<8x128xi32>
    %128 = arith.cmpi eq, %127, %3 : vector<8x128xi32>
    %129 = arith.extui %128 : vector<8x128xi1> to vector<8x128xi32>
    %130 = arith.sitofp %129 : vector<8x128xi32> to vector<8x128xf32>
    %cst_50 = arith.constant dense<0.000000e+00> : vector<8x128xf32>
    %131 = tpu.matmul %130, %0, %cst_50 {dimension_numbers = #tpu.dot_dimension_numbers<[1], [0], [0], [1], [0, 0, 1, 1], [], []>} : vector<8x128xf32>, vector<128x128xf32>, vector<8x128xf32> -> vector<8x128xf32>
    %132 = vector.broadcast %2 : vector<1x128xf32> to vector<8x128xf32>
    %133 = arith.addf %131, %132 : vector<8x128xf32>
    %cst_51 = arith.constant dense<0.000000e+00> : vector<8x128xf32>
    %134 = tpu.matmul %119, %1, %cst_51 {dimension_numbers = #tpu.dot_dimension_numbers<[1], [0], [0], [1], [0, 0, 1, 1], [], []>} : vector<8x128xf32>, vector<128x128xf32>, vector<8x128xf32> -> vector<8x128xf32>
    %135 = arith.addf %134, %133 : vector<8x128xf32>
    %136 = math.tanh %135 : vector<8x128xf32>
    %137 = arith.index_cast %c7_i32 : i32 to index
    %c0_52 = arith.constant 0 : index
    %c0_53 = arith.constant 0 : index
    %138 = vector.load %arg10[%137, %c0_52, %c0_53] : memref<8x8x128xf32, #tpu.memory_space<vmem>>, vector<1x8x128xf32>
    %139 = vector.shape_cast %138 : vector<1x8x128xf32> to vector<8x128xf32>
    %140 = vector.shape_cast %136 : vector<8x128xf32> to vector<1x8x128xf32>
    tpu.vector_store %arg10[%137, %c0_52, %c0_53], %140 {strides = array<i32>} : memref<8x8x128xf32, #tpu.memory_space<vmem>>, vector<1x8x128xf32>,
    %c8_i32 = arith.constant 8 : i32
    %c0_54 = arith.constant 0 : index
    %c0_55 = arith.constant 0 : index
    %141 = vector.load %arg9[%c0_54, %c0_55] : memref<8x128xf32, #tpu.memory_space<vmem>>, vector<8x128xf32>
    tpu.vector_store %arg9[%c0_54, %c0_55], %136 {strides = array<i32>} : memref<8x128xf32, #tpu.memory_space<vmem>>, vector<8x128xf32>,
    %c0_56 = arith.constant 0 : index
    %c0_57 = arith.constant 0 : index
    %c0_58 = arith.constant 0 : index
    %142 = vector.load %arg10[%c0_56, %c0_57, %c0_58] : memref<8x8x128xf32, #tpu.memory_space<vmem>>, vector<8x8x128xf32>
    %143 = vector.shape_cast %142 : vector<8x8x128xf32> to vector<64x128xf32>
    %c0_59 = arith.constant 0 : index
    %c0_60 = arith.constant 0 : index
    %144 = vector.load %arg5[%c0_59, %c0_60] : memref<128x128xf32, #tpu.memory_space<vmem>>, vector<128x128xf32>
    %cst_61 = arith.constant dense<0.000000e+00> : vector<64x128xf32>
    %145 = tpu.matmul %143, %144, %cst_61 {dimension_numbers = #tpu.dot_dimension_numbers<[1], [0], [0], [1], [0, 0, 1, 1], [], []>} : vector<64x128xf32>, vector<128x128xf32>, vector<64x128xf32> -> vector<64x128xf32>
    %c0_62 = arith.constant 0 : index
    %c0_63 = arith.constant 0 : index
    %146 = vector.load %arg7[%c0_62, %c0_63] : memref<1x128xf32, #tpu.memory_space<vmem>>, vector<1x128xf32>
    %147 = vector.broadcast %146 : vector<1x128xf32> to vector<64x128xf32>
    %148 = arith.addf %145, %147 : vector<64x128xf32>
    %c0_64 = arith.constant 0 : index
    %c0_65 = arith.constant 0 : index
    %149 = vector.load %arg8[%c0_64, %c0_65] : memref<64x128xf32, #tpu.memory_space<vmem>>, vector<64x128xf32>
    tpu.vector_store %arg8[%c0_64, %c0_65], %148 {strides = array<i32>} : memref<64x128xf32, #tpu.memory_space<vmem>>, vector<64x128xf32>,
    return
  }
  func.func @transform_0(%arg0: i32) -> (i32, i32, i32) {
    %c0_i32 = arith.constant 0 : i32
    %c0_i32_0 = arith.constant 0 : i32
    %c0_i32_1 = arith.constant 0 : i32
    %c0_i32_2 = arith.constant 0 : i32
    return %c0_i32, %c0_i32_0, %c0_i32_1 : i32, i32, i32
  }
  func.func @transform_1(%arg0: i32) -> (i32, i32) {
    %c0_i32 = arith.constant 0 : i32
    %c0_i32_0 = arith.constant 0 : i32
    %c0_i32_1 = arith.constant 0 : i32
    return %c0_i32, %c0_i32_0 : i32, i32
  }
  func.func @transform_2(%arg0: i32) -> (i32, i32) {
    %c0_i32 = arith.constant 0 : i32
    %c0_i32_0 = arith.constant 0 : i32
    %c0_i32_1 = arith.constant 0 : i32
    return %c0_i32, %c0_i32_0 : i32, i32
  }
  func.func @transform_3(%arg0: i32) -> (i32, i32) {
    %c0_i32 = arith.constant 0 : i32
    %c0_i32_0 = arith.constant 0 : i32
    %c0_i32_1 = arith.constant 0 : i32
    return %c0_i32, %c0_i32_0 : i32, i32
  }
  func.func @transform_4(%arg0: i32) -> (i32, i32) {
    %c0_i32 = arith.constant 0 : i32
    %c0_i32_0 = arith.constant 0 : i32
    %c0_i32_1 = arith.constant 0 : i32
    return %c0_i32, %c0_i32_0 : i32, i32
  }
  func.func @transform_5(%arg0: i32) -> (i32, i32) {
    %c0_i32 = arith.constant 0 : i32
    %c0_i32_0 = arith.constant 0 : i32
    %c0_i32_1 = arith.constant 0 : i32
    return %c0_i32, %c0_i32_0 : i32, i32
  }
  func.func @transform_6(%arg0: i32) -> (i32, i32) {
    %c0_i32 = arith.constant 0 : i32
    %c0_i32_0 = arith.constant 0 : i32
    %c0_i32_1 = arith.constant 0 : i32
    return %c0_i32, %c0_i32_0 : i32, i32
  }
  func.func @transform_7(%arg0: i32) -> (i32, i32) {
    %c0_i32 = arith.constant 0 : i32
    %c0_i32_0 = arith.constant 0 : i32
    %c0_i32_1 = arith.constant 0 : i32
    return %c0_i32, %c0_i32_0 : i32, i32
  }
  func.func @transform_8(%arg0: i32) -> (i32, i32) {
    %c0_i32 = arith.constant 0 : i32
    %c0_i32_0 = arith.constant 0 : i32
    %c0_i32_1 = arith.constant 0 : i32
    return %c0_i32, %c0_i32_0 : i32, i32
  }
}

</mosaic_0001>

<bundles_post_ra>
// kernel: tpu_custom_call.1
= control target key start
LH: loop header
LB: loop body
LE: loop exit
PB: predicated region body
PF: predicated region fallthrough
CT: control target
= control target key end

     0   :  { %14 = vsyncpa [#allocation4], 0  ;;  %s1295_s0 = inlined_call_operand.vmem [shape: s32[8,8,1], index: 0, kind: input, shape index: {}]   ;;  %s1296_s1 = inlined_call_operand.vmem [shape: f32[8,128], index: 1, kind: input, shape index: {}]   ;;  %s1297_s2 = inlined_call_operand.hbm [shape: f32[128,128], index: 2, kind: input, shape index: {}]   ;;  %s1298_s3 = inlined_call_operand.hbm [shape: f32[128,128], index: 3, kind: input, shape index: {}]   ;;  %s1299_s4 = inlined_call_operand.hbm [shape: f32[128,128], index: 4, kind: input, shape index: {}]   ;;  %s1300_s5 = inlined_call_operand.vmem [shape: f32[1,128], index: 5, kind: input, shape index: {}]   ;;  %s1301_s6 = inlined_call_operand.vmem [shape: f32[1,128], index: 6, kind: input, shape index: {}]   ;;  %s1302_s7 = inlined_call_operand.hbm [shape: f32[64,128], index: 7, kind: output, shape index: {0}]   ;;  %s1303_s8 = inlined_call_operand.hbm [shape: f32[8,128], index: 8, kind: output, shape index: {1}]  }
   0x1   :  { %15 = vsyncpa [#allocation7], 0 }
   0x2   :  { %16 = vsyncpa [#allocation5], 0 }
   0x3   :  { %17 = vsyncpa [#allocation11], 0  ;;  %s39_s29 = sshll.u32 %s1298_s3, 4  ;;  %s817_s30 = smov [#allocation6]   ;;  %s40_s29 = int_to_ptr.hbm [resolvable:$true] %s39_s29 }
   0x4   :  { %s41_s9 = sshll.u32 %s817_s30, 4  ;;  %s26_s12 = sshll.u32 %s1297_s2, 4  ;;  %s42_s9 = int_to_ptr.vmem [resolvable:$true] %s41_s9  ;;  %s27_s12 = int_to_ptr.hbm [resolvable:$true] %s26_s12 }
   0x5   :  { %s818_s13 = smov 128   ;;  %s819_s14 = smov 8  }
   0x6   :  { %47 = dma.hbm_to_vmem [thread:$0]  %s40_s29, 2048, %s42_s9, [#allocation7], %s818_s13, %s818_s13, %s819_s14  }
   0x7   :  { %s820_s15 = smov [#allocation3]   ;;  %s52_s3 = sshll.u32 %s1299_s4, 4  ;;  %s53_s3 = int_to_ptr.hbm [resolvable:$true] %s52_s3 }
   0x8   :  { %s28_s16 = sshll.u32 %s820_s15, 4  ;;  %s821_s2 = smov [#allocation8]   ;;  %s29_s16 = int_to_ptr.vmem [resolvable:$true] %s28_s16 }
   0x9   :  { %34 = dma.hbm_to_vmem [thread:$0]  %s27_s12, 2048, %s29_s16, [#allocation4], %s818_s13, %s818_s13, %s819_s14  }
   0xa   :  { %s54_s19 = sshll.u32 %s821_s2, 4  ;;  %s55_s19 = int_to_ptr.vmem [resolvable:$true] %s54_s19 }
   0xb   :  { %60 = dma.hbm_to_vmem [thread:$0]  %s53_s3, 2048, %s55_s19, [#allocation7], %s818_s13, %s818_s13, %s819_s14  }
   0xc   :  { %809 = dma.done.wait [#allocation4], 2048  }
   0xd   :  { %810 = vsyncadd [#allocation4], 4294965248 }
   0xe   :  { %811 = dma.done.wait [#allocation7], 4096  }
   0xf   :  { %812 = vsyncadd [#allocation7], 4294963200  ;;  %v822_v0 = vmov 0   ;;  %v113_v1 = vld [vmem:[%s1295_s0] sm:$0xff]  ;;  %v895_v3 = vld [vmem:[#allocation3 + $0x78] sm:$0xff]  ;;  %v110_v35 = vlaneseq  ;;  %v823_v40 = vmov 1.0  }
  0x10   :  { %668 = vset.pattern.permute.xlu0 %v822_v0  ;;  %670 = vset.pattern.permute.xlu2 %v822_v0  ;;  %v647_v2 = vld [vmem:[%s1295_s0 + $0x20] sm:$0xff]  ;;  %v897_v4 = vld [vmem:[#allocation3 + $0x70] sm:$0xff]  ;;  %v900_v5 = vld [vmem:[#allocation3 + $0x68] sm:$0xff]  ;;  %s620_s19 = sshll.u32 %s1303_s8, 4  ;;  %s825_s4 = smov [#allocation9]   ;;  %s621_s19 = int_to_ptr.hbm [resolvable:$true] %s620_s19 }
  0x11   :  { %669 = vset.pattern.permute.xlu1 %v822_v0  ;;  %115 = vperm.xlu0 %668, %v113_v1   ;;  %v905_v6 = vld [vmem:[#allocation3 + $0x60] sm:$0xff]  ;;  %v638_v7 = vld [vmem:[%s1295_s0 + $0x8] sm:$0xff]  ;;  %v913_v8 = vld [vmem:[#allocation3 + $0x58] sm:$0xff]  ;;  %v1073_v37 = vand.u32 127, %v110_v35  ;;  %s604_s20 = sshll.u32 %s825_s4, 4  ;;  %s606_s23 = sshll.u32 %s1302_s7, 4  ;;  %s605_s20 = int_to_ptr.vmem [resolvable:$true] %s604_s20  ;;  %s607_s23 = int_to_ptr.hbm [resolvable:$true] %s606_s23 }
  0x12   :  { %321 = vperm.xlu2 %670, %v647_v2   ;;  %123 = vmatpush.msra.mxu1 %v895_v3  ;;  %v916_v9 = vld [vmem:[#allocation6 + $0x78] sm:$0xff]  ;;  %v921_v10 = vld [vmem:[#allocation3 + $0x50] sm:$0xff]  ;;  %v928_v12 = vld [vmem:[#allocation3 + $0x48] sm:$0xff] }
  0x13   :  { %326 = vmatpush.msra.mxu0 %v895_v3  ;;  %173 = vmatpush.msra.mxu2 %v895_v3  ;;  %v925_v11 = vld [vmem:[#allocation6 + $0x70] sm:$0xff]  ;;  %v933_v13 = vld [vmem:[#allocation6 + $0x68] sm:$0xff]  ;;  %v936_v14 = vld [vmem:[#allocation3 + $0x40] sm:$0xff] }
  0x14   :  { %124 = vmatpush.msra.mxu1 %v897_v4  ;;  %193 = vmatpush.msra.mxu3 %v916_v9  ;;  %v653_v15 = vld [vmem:[%s1295_s0 + $0x30] sm:$0xff]  ;;  %v944_v16 = vld [vmem:[#allocation6 + $0x60] sm:$0xff]  ;;  %v947_v17 = vld [vmem:[#allocation3 + $0x38] sm:$0xff] }
  0x15   :  { %327 = vmatpush.msra.mxu0 %v897_v4  ;;  %174 = vmatpush.msra.mxu2 %v897_v4  ;;  %v953_v18 = vld [vmem:[#allocation3 + $0x30] sm:$0xff]  ;;  %v957_v19 = vld [vmem:[#allocation6 + $0x58] sm:$0xff]  ;;  %v960_v20 = vld [vmem:[#allocation3 + $0x28] sm:$0xff] }
  0x16   :  { %125 = vmatpush.msra.mxu1 %v900_v5  ;;  %194 = vmatpush.msra.mxu3 %v925_v11  ;;  %v965_v21 = vld [vmem:[#allocation6 + $0x50] sm:$0xff]  ;;  %v968_v22 = vld [vmem:[#allocation3 + $0x20] sm:$0xff]  ;;  %v973_v23 = vld [vmem:[#allocation6 + $0x48] sm:$0xff] }
  0x17   :  { %328 = vmatpush.msra.mxu0 %v900_v5  ;;  %175 = vmatpush.msra.mxu2 %v900_v5  ;;  %v976_v24 = vld [vmem:[#allocation3 + $0x18] sm:$0xff]  ;;  %v981_v25 = vld [vmem:[#allocation6 + $0x40] sm:$0xff]  ;;  %v984_v26 = vld [vmem:[#allocation3 + $0x10] sm:$0xff] }
  0x18   :  { %126 = vmatpush.msra.mxu1 %v905_v6  ;;  %195 = vmatpush.msra.mxu3 %v933_v13  ;;  %v989_v27 = vld [vmem:[#allocation6 + $0x38] sm:$0xff]  ;;  %v992_v28 = vld [vmem:[#allocation3 + $0x8] sm:$0xff]  ;;  %v997_v29 = vld [vmem:[#allocation6 + $0x30] sm:$0xff] }
  0x19   :  { %168 = vperm.xlu0 %668, %v638_v7   ;;  %329 = vmatpush.msra.mxu0 %v905_v6  ;;  %v1000_v30 = vld [vmem:[#allocation3] sm:$0xff]  ;;  %v1005_v31 = vld [vmem:[#allocation6 + $0x28] sm:$0xff]  ;;  %v1061_v33 = vld [vmem:[#allocation6 + $0x18] sm:$0xff] }
  0x1a   :  { %127 = vmatpush.msra.mxu1 %v913_v8  ;;  %176 = vmatpush.msra.mxu2 %v905_v6  ;;  %v1057_v32 = vld [vmem:[#allocation6 + $0x20] sm:$0xff]  ;;  %v1063_v34 = vld [vmem:[#allocation6 + $0x10] sm:$0xff]  ;;  %v1067_v36 = vld [vmem:[#allocation6 + $0x8] sm:$0xff] }
  0x1b   :  { %330 = vmatpush.msra.mxu0 %v913_v8  ;;  %196 = vmatpush.msra.mxu3 %v944_v16  ;;  %v1075_v38 = vld [vmem:[#allocation6] sm:$0xff]  ;;  %v641_v41 = vld [vmem:[%s1295_s0 + $0x10] sm:$0xff]  ;;  %v546_v42 = vld [vmem:[#allocation8 + $0x78] sm:$0xff] }
  0x1c   :  { %128 = vmatpush.msra.mxu1 %v921_v10  ;;  %177 = vmatpush.msra.mxu2 %v913_v8  ;;  %v545_v43 = vld [vmem:[#allocation8 + $0x70] sm:$0xff]  ;;  %v544_v44 = vld [vmem:[#allocation8 + $0x68] sm:$0xff]  ;;  %v543_v45 = vld [vmem:[#allocation8 + $0x60] sm:$0xff] }
  0x1d   :  { %331 = vmatpush.msra.mxu0 %v921_v10  ;;  %197 = vmatpush.msra.mxu3 %v957_v19  ;;  %v542_v46 = vld [vmem:[#allocation8 + $0x58] sm:$0xff]  ;;  %v541_v47 = vld [vmem:[#allocation8 + $0x50] sm:$0xff]  ;;  %v540_v48 = vld [vmem:[#allocation8 + $0x48] sm:$0xff] }
  0x1e   :  { %129 = vmatpush.msra.mxu1 %v928_v12  ;;  %178 = vmatpush.msra.mxu2 %v921_v10  ;;  %v112_v50 = vld [vmem:[%s1296_s1] sm:$0xff]  ;;  %v538_v54 = vld [vmem:[#allocation8 + $0x38] sm:$0xff]  ;;  %v537_v56 = vld [vmem:[#allocation8 + $0x30] sm:$0xff] }
  0x1f   :  { %332 = vmatpush.msra.mxu0 %v928_v12  ;;  %198 = vmatpush.msra.mxu3 %v965_v21  ;;  %v539_v53 = vld [vmem:[#allocation8 + $0x40] sm:$0xff]  ;;  %v644_v55 = vld [vmem:[%s1295_s0 + $0x18] sm:$0xff]  ;;  %v536_v57 = vld [vmem:[#allocation8 + $0x28] sm:$0xff] }
  0x20   :  { %130 = vmatpush.msra.mxu1 %v936_v14  ;;  %179 = vmatpush.msra.mxu2 %v928_v12  ;;  %v535_v58 = vld [vmem:[#allocation8 + $0x20] sm:$0xff]  ;;  %v534_v59 = vld [vmem:[#allocation8 + $0x18] sm:$0xff]  ;;  %v533_v60 = vld [vmem:[#allocation8 + $0x10] sm:$0xff] }
  0x21   :  { %423 = vperm.xlu0 %668, %v653_v15   ;;  %333 = vmatpush.msra.mxu0 %v936_v14  ;;  %v532_v61 = vld [vmem:[#allocation8 + $0x8] sm:$0xff]  ;;  %v531_v62 = vld [vmem:[#allocation8] sm:$0xff]  ;;  %v656_v63 = vld [vmem:[%s1295_s0 + $0x38] sm:$0xff] }
  0x22   :  { %131 = vmatpush.msra.mxu1 %v947_v17  ;;  %180 = vmatpush.msra.mxu2 %v936_v14  ;;  %v650_v0 = vld [vmem:[%s1295_s0 + $0x28] sm:$0xff]  ;;  %v1178_v7 = vld [vmem:[%s1300_s5] ss:$0 sm:$0xff] }
  0x23   :  { %334 = vmatpush.msra.mxu0 %v947_v17  ;;  %199 = vmatpush.msra.mxu3 %v973_v23 }
  0x24   :  { %132 = vmatpush.msra.mxu1 %v953_v18  ;;  %181 = vmatpush.msra.mxu2 %v947_v17 }
  0x25   :  { %335 = vmatpush.msra.mxu0 %v953_v18  ;;  %200 = vmatpush.msra.mxu3 %v981_v25 }
  0x26   :  { %133 = vmatpush.msra.mxu1 %v960_v20  ;;  %182 = vmatpush.msra.mxu2 %v953_v18 }
  0x27   :  { %336 = vmatpush.msra.mxu0 %v960_v20  ;;  %201 = vmatpush.msra.mxu3 %v989_v27 }
  0x28   :  { %134 = vmatpush.msra.mxu1 %v968_v22  ;;  %183 = vmatpush.msra.mxu2 %v960_v20 }
  0x29   :  { %337 = vmatpush.msra.mxu0 %v968_v22  ;;  %202 = vmatpush.msra.mxu3 %v997_v29 }
  0x2a   :  { %135 = vmatpush.msra.mxu1 %v976_v24  ;;  %184 = vmatpush.msra.mxu2 %v968_v22 }
  0x2b   :  { %338 = vmatpush.msra.mxu0 %v976_v24  ;;  %203 = vmatpush.msra.mxu3 %v1005_v31 }
  0x2c   :  { %136 = vmatpush.msra.mxu1 %v984_v26  ;;  %185 = vmatpush.msra.mxu2 %v976_v24 }
  0x2d   :  { %339 = vmatpush.msra.mxu0 %v984_v26  ;;  %204 = vmatpush.msra.mxu3 %v1057_v32 }
  0x2e   :  { %137 = vmatpush.msra.mxu1 %v992_v28  ;;  %186 = vmatpush.msra.mxu2 %v984_v26 }
  0x2f   :  { %340 = vmatpush.msra.mxu0 %v992_v28  ;;  %205 = vmatpush.msra.mxu3 %v1061_v33 }
  0x30   :  { %138 = vmatpush.msra.mxu1 %v1000_v30  ;;  %187 = vmatpush.msra.mxu2 %v992_v28 }
  0x31   :  { %341 = vmatpush.msra.mxu0 %v1000_v30  ;;  %206 = vmatpush.msra.mxu3 %v1063_v34 }
  0x32   :  { %143 = vmatpush.msrb.mxu1 %v916_v9  ;;  %188 = vmatpush.msra.mxu2 %v1000_v30 }
  0x33   :  { %428 = vmatpush.msrb.mxu0 %v895_v3  ;;  %207 = vmatpush.msra.mxu3 %v1067_v36 }
  0x34   :  { %144 = vmatpush.msrb.mxu1 %v925_v11  ;;  %224 = vmatpush.msrb.mxu2 %v895_v3 }
  0x35   :  { %429 = vmatpush.msrb.mxu0 %v897_v4  ;;  %208 = vmatpush.msra.mxu3 %v1075_v38 }
  0x36   :  { %145 = vmatpush.msrb.mxu1 %v933_v13  ;;  %225 = vmatpush.msrb.mxu2 %v897_v4 }
  0x37   :  { %430 = vmatpush.msrb.mxu0 %v900_v5  ;;  %295 = vmatpush.msrb.mxu3 %v916_v9 }
  0x38   :  { %146 = vmatpush.msrb.mxu1 %v944_v16  ;;  %226 = vmatpush.msrb.mxu2 %v900_v5 }
  0x39   :  { %431 = vmatpush.msrb.mxu0 %v905_v6  ;;  %296 = vmatpush.msrb.mxu3 %v925_v11 }
  0x3a   :  { %147 = vmatpush.msrb.mxu1 %v957_v19  ;;  %227 = vmatpush.msrb.mxu2 %v905_v6 }
  0x3b   :  { %432 = vmatpush.msrb.mxu0 %v913_v8  ;;  %297 = vmatpush.msrb.mxu3 %v933_v13 }
  0x3c   :  { %148 = vmatpush.msrb.mxu1 %v965_v21  ;;  %228 = vmatpush.msrb.mxu2 %v913_v8 }
  0x3d   :  { %433 = vmatpush.msrb.mxu0 %v921_v10  ;;  %298 = vmatpush.msrb.mxu3 %v944_v16 }
  0x3e   :  { %149 = vmatpush.msrb.mxu1 %v973_v23  ;;  %229 = vmatpush.msrb.mxu2 %v921_v10 }
  0x3f   :  { %434 = vmatpush.msrb.mxu0 %v928_v12  ;;  %299 = vmatpush.msrb.mxu3 %v957_v19 }
  0x40   :  { %150 = vmatpush.msrb.mxu1 %v981_v25  ;;  %230 = vmatpush.msrb.mxu2 %v928_v12 }
  0x41   :  { %435 = vmatpush.msrb.mxu0 %v936_v14  ;;  %219 = vperm.xlu1 %669, %v641_v41  }
  0x42   :  { %151 = vmatpush.msrb.mxu1 %v989_v27  ;;  %231 = vmatpush.msrb.mxu2 %v936_v14 }
  0x43   :  { %436 = vmatpush.msrb.mxu0 %v947_v17  ;;  %300 = vmatpush.msrb.mxu3 %v965_v21 }
  0x44   :  { %152 = vmatpush.msrb.mxu1 %v997_v29  ;;  %232 = vmatpush.msrb.mxu2 %v947_v17 }
  0x45   :  { %437 = vmatpush.msrb.mxu0 %v953_v18  ;;  %301 = vmatpush.msrb.mxu3 %v973_v23 }
  0x46   :  { %153 = vmatpush.msrb.mxu1 %v1005_v31  ;;  %233 = vmatpush.msrb.mxu2 %v953_v18 }
  0x47   :  { %438 = vmatpush.msrb.mxu0 %v960_v20  ;;  %302 = vmatpush.msrb.mxu3 %v981_v25 }
  0x48   :  { %234 = vmatpush.msrb.mxu2 %v960_v20  ;;  %154 = vmatpush.msrb.mxu1 %v1057_v32 }
  0x49   :  { %439 = vmatpush.msrb.mxu0 %v968_v22  ;;  %303 = vmatpush.msrb.mxu3 %v989_v27 }
  0x4a   :  { %235 = vmatpush.msrb.mxu2 %v968_v22  ;;  %155 = vmatpush.msrb.mxu1 %v1061_v33 }
  0x4b   :  { %440 = vmatpush.msrb.mxu0 %v976_v24  ;;  %304 = vmatpush.msrb.mxu3 %v997_v29 }
  0x4c   :  { %236 = vmatpush.msrb.mxu2 %v976_v24  ;;  %156 = vmatpush.msrb.mxu1 %v1063_v34 }
  0x4d   :  { %441 = vmatpush.msrb.mxu0 %v984_v26  ;;  %305 = vmatpush.msrb.mxu3 %v1005_v31 }
  0x4e   :  { %237 = vmatpush.msrb.mxu2 %v984_v26  ;;  %157 = vmatpush.msrb.mxu1 %v1067_v36 }
  0x4f   :  { %442 = vmatpush.msrb.mxu0 %v992_v28  ;;  %306 = vmatpush.msrb.mxu3 %v1057_v32 }
  0x50   :  { %238 = vmatpush.msrb.mxu2 %v992_v28  ;;  %158 = vmatpush.msrb.mxu1 %v1075_v38 }
  0x51   :  { %443 = vmatpush.msrb.mxu0 %v1000_v30  ;;  %307 = vmatpush.msrb.mxu3 %v1061_v33 }
  0x52   :  { %239 = vmatpush.msrb.mxu2 %v1000_v30  ;;  %270 = vperm.xlu1 %669, %v644_v55  }
  0x53   :  { %308 = vmatpush.msrb.mxu3 %v1063_v34  ;;  %372 = vperm.xlu2 %670, %v650_v0  }
  0x55   :  { %309 = vmatpush.msrb.mxu3 %v1067_v36 }
  0x57   :  { %310 = vmatpush.msrb.mxu3 %v1075_v38 }
  0x5a   :  { %474 = vperm.xlu1 %669, %v656_v63  }
  0x6c   :  { %v322_v39 = vpop.permute.xlu2 %321 }
  0x6d   :  { %vm323_vm0 = vcmp.eq.s32.totalorder %v322_v39, %v1073_v37 }
  0x6e   :  { %649 = vmatmul.msk.f32.vlgmr.msra.gmra.mxu0 %vm323_vm0, %v823_v40 }
  0x6f   :  { %551 = vmatpush.msra.mxu0 %v546_v42 }
  0x71   :  { %552 = vmatpush.msra.mxu0 %v545_v43 }
  0x73   :  { %553 = vmatpush.msra.mxu0 %v544_v44 }
  0x75   :  { %554 = vmatpush.msra.mxu0 %v543_v45 }
  0x77   :  { %555 = vmatpush.msra.mxu0 %v542_v46 }
  0x79   :  { %556 = vmatpush.msra.mxu0 %v541_v47 }
  0x7b   :  { %557 = vmatpush.msra.mxu0 %v540_v48 }
  0x7d   :  { %558 = vmatpush.msra.mxu0 %v539_v53 }
  0x7f   :  { %559 = vmatpush.msra.mxu0 %v538_v54 }
  0x81   :  { %560 = vmatpush.msra.mxu0 %v537_v56 }
  0x83   :  { %v116_v49 = vpop.permute.xlu0 %115  ;;  %561 = vmatpush.msra.mxu0 %v536_v57 }
  0x84   :  { %vm117_vm1 = vcmp.eq.s32.totalorder %v116_v49, %v1073_v37 }
  0x85   :  { %637 = vmatmul.msk.f32.vlgmr.msra.gmra.mxu1 %vm117_vm1, %v823_v40  ;;  %562 = vmatpush.msra.mxu0 %v535_v58 }
  0x86   :  { %244 = vmatpush.msra.mxu1 %v916_v9 }
  0x87   :  { %563 = vmatpush.msra.mxu0 %v534_v59 }
  0x88   :  { %245 = vmatpush.msra.mxu1 %v925_v11 }
  0x89   :  { %564 = vmatpush.msra.mxu0 %v533_v60 }
  0x8a   :  { %246 = vmatpush.msra.mxu1 %v933_v13 }
  0x8b   :  { %v169_v51 = vpop.permute.xlu0 %168  ;;  %565 = vmatpush.msra.mxu0 %v532_v61 }
  0x8c   :  { %vm170_vm2 = vcmp.eq.s32.totalorder %v169_v51, %v1073_v37  ;;  %247 = vmatpush.msra.mxu1 %v944_v16 }
  0x8d   :  { %159 = vmatmul.f32.vlgmr.msrb.gmra.mxu1 %v112_v50  ;;  %640 = vmatmul.msk.f32.vlgmr.msra.gmra.mxu2 %vm170_vm2, %v823_v40 }
  0x8e   :  { %275 = vmatpush.msra.mxu2 %v895_v3  ;;  %248 = vmatpush.msra.mxu1 %v957_v19 }
  0x8f   :  { %566 = vmatpush.msra.mxu0 %v531_v62 }
  0x90   :  { %276 = vmatpush.msra.mxu2 %v897_v4  ;;  %249 = vmatpush.msra.mxu1 %v965_v21 }
  0x92   :  { %277 = vmatpush.msra.mxu2 %v900_v5  ;;  %250 = vmatpush.msra.mxu1 %v973_v23 }
  0x93   :  { %v424_v52 = vpop.permute.xlu0 %423 }
  0x94   :  { %vm425_vm3 = vcmp.eq.s32.totalorder %v424_v52, %v1073_v37  ;;  %278 = vmatpush.msra.mxu2 %v905_v6  ;;  %251 = vmatpush.msra.mxu1 %v981_v25 }
  0x95   :  { %655 = vmatmul.msk.f32.vlgmr.msrb.gmra.mxu0 %vm425_vm3, %v823_v40 }
  0x96   :  { %279 = vmatpush.msra.mxu2 %v913_v8  ;;  %252 = vmatpush.msra.mxu1 %v989_v27 }
  0x98   :  { %280 = vmatpush.msra.mxu2 %v921_v10  ;;  %253 = vmatpush.msra.mxu1 %v997_v29 }
  0x9a   :  { %281 = vmatpush.msra.mxu2 %v928_v12  ;;  %254 = vmatpush.msra.mxu1 %v1005_v31 }
  0x9c   :  { %282 = vmatpush.msra.mxu2 %v936_v14  ;;  %255 = vmatpush.msra.mxu1 %v1057_v32 }
  0x9e   :  { %283 = vmatpush.msra.mxu2 %v947_v17  ;;  %256 = vmatpush.msra.mxu1 %v1061_v33 }
  0xa0   :  { %284 = vmatpush.msra.mxu2 %v953_v18  ;;  %257 = vmatpush.msra.mxu1 %v1063_v34 }
  0xa2   :  { %285 = vmatpush.msra.mxu2 %v960_v20  ;;  %258 = vmatpush.msra.mxu1 %v1067_v36 }
  0xa4   :  { %286 = vmatpush.msra.mxu2 %v968_v22  ;;  %259 = vmatpush.msra.mxu1 %v1075_v38 }
  0xa6   :  { %346 = vmatpush.msrb.mxu1 %v916_v9  ;;  %287 = vmatpush.msra.mxu2 %v976_v24 }
  0xa8   :  { %347 = vmatpush.msrb.mxu1 %v925_v11  ;;  %288 = vmatpush.msra.mxu2 %v984_v26 }
  0xaa   :  { %348 = vmatpush.msrb.mxu1 %v933_v13  ;;  %289 = vmatpush.msra.mxu2 %v992_v28 }
  0xac   :  { %349 = vmatpush.msrb.mxu1 %v944_v16  ;;  %290 = vmatpush.msra.mxu2 %v1000_v30 }
  0xad   :  { %v373_v43 = vpop.permute.xlu2 %372 }
  0xae   :  { %350 = vmatpush.msrb.mxu1 %v957_v19  ;;  %vm374_vm6 = vcmp.eq.s32.totalorder %v373_v43, %v1073_v37 }
  0xb0   :  { %351 = vmatpush.msrb.mxu1 %v965_v21 }
  0xb2   :  { %352 = vmatpush.msrb.mxu1 %v973_v23 }
  0xb3   :  { %v220_v1 = vpop.permute.xlu1 %219 }
  0xb4   :  { %353 = vmatpush.msrb.mxu1 %v981_v25  ;;  %vm221_vm4 = vcmp.eq.s32.totalorder %v220_v1, %v1073_v37 }
  0xb5   :  { %643 = vmatmul.msk.f32.vlgmr.msrb.gmra.mxu2 %vm221_vm4, %v823_v40 }
  0xb6   :  { %354 = vmatpush.msrb.mxu1 %v989_v27  ;;  %377 = vmatpush.msrb.mxu2 %v895_v3 }
  0xb8   :  { %355 = vmatpush.msrb.mxu1 %v997_v29  ;;  %378 = vmatpush.msrb.mxu2 %v897_v4 }
  0xba   :  { %356 = vmatpush.msrb.mxu1 %v1005_v31  ;;  %379 = vmatpush.msrb.mxu2 %v900_v5 }
  0xbc   :  { %357 = vmatpush.msrb.mxu1 %v1057_v32  ;;  %380 = vmatpush.msrb.mxu2 %v905_v6 }
  0xbe   :  { %358 = vmatpush.msrb.mxu1 %v1061_v33  ;;  %381 = vmatpush.msrb.mxu2 %v913_v8 }
  0xc0   :  { %359 = vmatpush.msrb.mxu1 %v1063_v34  ;;  %382 = vmatpush.msrb.mxu2 %v921_v10 }
  0xc2   :  { %360 = vmatpush.msrb.mxu1 %v1067_v36  ;;  %383 = vmatpush.msrb.mxu2 %v928_v12 }
  0xc4   :  { %361 = vmatpush.msrb.mxu1 %v1075_v38  ;;  %384 = vmatpush.msrb.mxu2 %v936_v14  ;;  %v271_v42 = vpop.permute.xlu1 %270 }
  0xc5   :  { %vm272_vm5 = vcmp.eq.s32.totalorder %v271_v42, %v1073_v37 }
  0xc6   :  { %385 = vmatpush.msrb.mxu2 %v947_v17 }
  0xc7   :  { %646 = vmatmul.msk.f32.vlgmr.msra.gmra.mxu2 %vm272_vm5, %v823_v40 }
  0xc8   :  { %386 = vmatpush.msrb.mxu2 %v953_v18 }
  0xca   :  { %387 = vmatpush.msrb.mxu2 %v960_v20 }
  0xcc   :  { %388 = vmatpush.msrb.mxu2 %v968_v22 }
  0xce   :  { %389 = vmatpush.msrb.mxu2 %v976_v24 }
  0xd0   :  { %390 = vmatpush.msrb.mxu2 %v984_v26 }
  0xd2   :  { %391 = vmatpush.msrb.mxu2 %v992_v28 }
  0xd4   :  { %392 = vmatpush.msrb.mxu2 %v1000_v30 }
  0xd5   :  { %652 = vmatmul.msk.f32.vlgmr.msrb.gmra.mxu2 %vm374_vm6, %v823_v40 }
  0xd6   :  { %479 = vmatpush.msra.mxu2 %v895_v3  ;;  %v475_v3 = vpop.permute.xlu1 %474 }
  0xd7   :  { %vm476_vm7 = vcmp.eq.s32.totalorder %v475_v3, %v1073_v37 }
  0xd8   :  { %480 = vmatpush.msra.mxu2 %v897_v4 }
  0xda   :  { %481 = vmatpush.msra.mxu2 %v900_v5 }
  0xdc   :  { %482 = vmatpush.msra.mxu2 %v905_v6  ;;  %v1235_v6 = vld [vmem:[%s1301_s6] ss:$0 sm:$0xff]  ;;  %s824_s6 = smov [#allocation10]  }
  0xdd   :  { %s618_s18 = sshll.u32 %s824_s6, 4  ;;  %s619_s18 = int_to_ptr.vmem [resolvable:$true] %s618_s18 }
  0xde   :  { %483 = vmatpush.msra.mxu2 %v913_v8 }
  0xe0   :  { %484 = vmatpush.msra.mxu2 %v921_v10 }
  0xe2   :  { %485 = vmatpush.msra.mxu2 %v928_v12 }
  0xe4   :  { %486 = vmatpush.msra.mxu2 %v936_v14 }
  0xe6   :  { %487 = vmatpush.msra.mxu2 %v947_v17 }
  0xe8   :  { %488 = vmatpush.msra.mxu2 %v953_v18 }
  0xea   :  { %489 = vmatpush.msra.mxu2 %v960_v20 }
  0xeb   :  { %v1228_v4 = vpop.f32.mrf.mxu0 }
  0xec   :  { %490 = vmatpush.msra.mxu2 %v968_v22 }
  0xee   :  { %491 = vmatpush.msra.mxu2 %v976_v24 }
  0xf0   :  { %492 = vmatpush.msra.mxu2 %v984_v26 }
  0xf2   :  { %493 = vmatpush.msra.mxu2 %v992_v28 }
  0xf4   :  { %494 = vmatpush.msra.mxu2 %v1000_v30 }
  0xf5   :  { %658 = vmatmul.msk.f32.vlgmr.msra.gmra.mxu2 %vm476_vm7, %v823_v40 }
 0x102   :  { %v140_v2 = vpop.f32.mrf.mxu1 }
 0x103   :  { %v141_v15 = vadd.f32 %v1178_v7, %v140_v2 }
 0x10a   :  { %v160_v35 = vpop.f32.mrf.mxu1 }
 0x10b   :  { %v161_v39 = vadd.f32 %v160_v35, %v141_v15 }
 0x10d   :  { %673 = vtanh.f32 %v161_v39 }
 0x110   :  { %v190_v12 = vpop.f32.mrf.mxu2 }
 0x111   :  { %v191_v14 = vadd.f32 %v1178_v7, %v190_v12 }
 0x112   :  { %v1230_v5 = vpop.f32.mrf.mxu0 }
 0x113   :  { %v674_v41 = vpop.eup %673  ;;  %v446_v48 = vadd.f32 %v1178_v7, %v1230_v5 }
 0x114   :  { %209 = vmatmul.f32.vlgmr.msra.gmra.mxu3 %v674_v41  ;;  %567 = vmatmul.f32.vlgmr.msra.gmra.mxu0 %v674_v41 }
 0x115   :  { %397 = vmatpush.msra.mxu3 %v916_v9 }
 0x117   :  { %398 = vmatpush.msra.mxu3 %v925_v11 }
 0x119   :  { %399 = vmatpush.msra.mxu3 %v933_v13 }
 0x11b   :  { %400 = vmatpush.msra.mxu3 %v944_v16 }
 0x11d   :  { %401 = vmatpush.msra.mxu3 %v957_v19 }
 0x11f   :  { %402 = vmatpush.msra.mxu3 %v965_v21 }
 0x121   :  { %403 = vmatpush.msra.mxu3 %v973_v23 }
 0x123   :  { %404 = vmatpush.msra.mxu3 %v981_v25 }
 0x125   :  { %405 = vmatpush.msra.mxu3 %v989_v27 }
 0x127   :  { %406 = vmatpush.msra.mxu3 %v997_v29 }
 0x129   :  { %407 = vmatpush.msra.mxu3 %v1005_v31 }
 0x12b   :  { %408 = vmatpush.msra.mxu3 %v1057_v32 }
 0x12d   :  { %409 = vmatpush.msra.mxu3 %v1061_v33 }
 0x12f   :  { %410 = vmatpush.msra.mxu3 %v1063_v34 }
 0x131   :  { %411 = vmatpush.msra.mxu3 %v1067_v36 }
 0x133   :  { %412 = vmatpush.msra.mxu3 %v1075_v38 }
 0x138   :  { %v241_v22 = vpop.f32.mrf.mxu2 }
 0x139   :  { %v242_v24 = vadd.f32 %v1178_v7, %v241_v22 }
 0x191   :  { %v568_v8 = vpop.f32.mrf.mxu0 }
 0x192   :  { %v569_v10 = vadd.f32 %v1235_v6, %v568_v8 }
 0x194   :  { %592 = vst [vmem:[#allocation9] sm:$0xff] %v569_v10 }
 0x197   :  { %v210_v17 = vpop.f32.mrf.mxu3 }
 0x198   :  { %v211_v18 = vadd.f32 %v210_v17, %v191_v14 }
 0x19a   :  { %675 = vtanh.f32 %v211_v18 }
 0x1a0   :  { %v676_v20 = vpop.eup %675 }
 0x1a1   :  { %260 = vmatmul.f32.vlgmr.msra.gmra.mxu1 %v676_v20  ;;  %570 = vmatmul.f32.gmra.mxu0 %v676_v20 }
 0x1a2   :  { %448 = vmatpush.msra.mxu1 %v916_v9 }
 0x1a4   :  { %449 = vmatpush.msra.mxu1 %v925_v11 }
 0x1a6   :  { %450 = vmatpush.msra.mxu1 %v933_v13 }
 0x1a8   :  { %451 = vmatpush.msra.mxu1 %v944_v16 }
 0x1aa   :  { %452 = vmatpush.msra.mxu1 %v957_v19 }
 0x1ac   :  { %453 = vmatpush.msra.mxu1 %v965_v21 }
 0x1ae   :  { %454 = vmatpush.msra.mxu1 %v973_v23 }
 0x1b0   :  { %455 = vmatpush.msra.mxu1 %v981_v25 }
 0x1b2   :  { %456 = vmatpush.msra.mxu1 %v989_v27 }
 0x1b4   :  { %457 = vmatpush.msra.mxu1 %v997_v29 }
 0x1b6   :  { %458 = vmatpush.msra.mxu1 %v1005_v31 }
 0x1b8   :  { %459 = vmatpush.msra.mxu1 %v1057_v32 }
 0x1ba   :  { %460 = vmatpush.msra.mxu1 %v1061_v33 }
 0x1bc   :  { %461 = vmatpush.msra.mxu1 %v1063_v34 }
 0x1be   :  { %462 = vmatpush.msra.mxu1 %v1067_v36 }
 0x1c0   :  { %463 = vmatpush.msra.mxu1 %v1075_v38 }
 0x21e   :  { %v261_v26 = vpop.f32.mrf.mxu1  ;;  %v571_v28 = vpop.f32.mrf.mxu0 }
 0x21f   :  { %v262_v30 = vadd.f32 %v261_v26, %v242_v24  ;;  %v572_v37 = vadd.f32 %v1235_v6, %v571_v28 }
 0x221   :  { %677 = vtanh.f32 %v262_v30  ;;  %593 = vst [vmem:[#allocation9 + $0x8] sm:$0xff] %v572_v37 }
 0x227   :  { %v678_v40 = vpop.eup %677 }
 0x228   :  { %311 = vmatmul.f32.vlgmr.msrb.gmra.mxu3 %v678_v40  ;;  %573 = vmatmul.f32.gmra.mxu0 %v678_v40 }
 0x229   :  { %499 = vmatpush.msrb.mxu3 %v916_v9 }
 0x22b   :  { %500 = vmatpush.msrb.mxu3 %v925_v11 }
 0x22d   :  { %501 = vmatpush.msrb.mxu3 %v933_v13  ;;  %v292_v13 = vpop.f32.mrf.mxu2 }
 0x22f   :  { %502 = vmatpush.msrb.mxu3 %v944_v16  ;;  %v293_v16 = vadd.f32 %v1178_v7, %v292_v13 }
 0x231   :  { %503 = vmatpush.msrb.mxu3 %v957_v19 }
 0x233   :  { %504 = vmatpush.msrb.mxu3 %v965_v21 }
 0x235   :  { %505 = vmatpush.msrb.mxu3 %v973_v23 }
 0x237   :  { %506 = vmatpush.msrb.mxu3 %v981_v25  ;;  %v344_v25 = vadd.f32 %v1178_v7, %v1228_v4 }
 0x239   :  { %507 = vmatpush.msrb.mxu3 %v989_v27 }
 0x23b   :  { %508 = vmatpush.msrb.mxu3 %v997_v29 }
 0x23d   :  { %509 = vmatpush.msrb.mxu3 %v1005_v31 }
 0x23f   :  { %510 = vmatpush.msrb.mxu3 %v1057_v32 }
 0x241   :  { %511 = vmatpush.msrb.mxu3 %v1061_v33 }
 0x243   :  { %512 = vmatpush.msrb.mxu3 %v1063_v34 }
 0x245   :  { %513 = vmatpush.msrb.mxu3 %v1067_v36 }
 0x247   :  { %514 = vmatpush.msrb.mxu3 %v1075_v38  ;;  %v394_v38 = vpop.f32.mrf.mxu2 }
 0x248   :  { %v395_v44 = vadd.f32 %v1178_v7, %v394_v38 }
 0x24f   :  { %v496_v56 = vpop.f32.mrf.mxu2 }
 0x250   :  { %v497_v57 = vadd.f32 %v1178_v7, %v496_v56 }
 0x2a5   :  { %v574_v9 = vpop.f32.mrf.mxu0 }
 0x2a6   :  { %v575_v11 = vadd.f32 %v1235_v6, %v574_v9 }
 0x2a8   :  { %594 = vst [vmem:[#allocation9 + $0x10] sm:$0xff] %v575_v11 }
 0x2ab   :  { %v312_v19 = vpop.f32.mrf.mxu3 }
 0x2ac   :  { %v313_v21 = vadd.f32 %v312_v19, %v293_v16 }
 0x2ae   :  { %679 = vtanh.f32 %v313_v21 }
 0x2b4   :  { %v680_v23 = vpop.eup %679 }
 0x2b5   :  { %362 = vmatmul.f32.vlgmr.msrb.gmra.mxu1 %v680_v23  ;;  %576 = vmatmul.f32.gmra.mxu0 %v680_v23 }
 0x332   :  { %v363_v27 = vpop.f32.mrf.mxu1  ;;  %v577_v29 = vpop.f32.mrf.mxu0 }
 0x333   :  { %v364_v31 = vadd.f32 %v363_v27, %v344_v25  ;;  %v578_v32 = vadd.f32 %v1235_v6, %v577_v29 }
 0x335   :  { %681 = vtanh.f32 %v364_v31  ;;  %595 = vst [vmem:[#allocation9 + $0x18] sm:$0xff] %v578_v32 }
 0x33b   :  { %v682_v33 = vpop.eup %681 }
 0x33c   :  { %413 = vmatmul.f32.vlgmr.msra.gmra.mxu3 %v682_v33  ;;  %579 = vmatmul.f32.gmra.mxu0 %v682_v33 }
 0x3b9   :  { %v580_v34 = vpop.f32.mrf.mxu0 }
 0x3ba   :  { %v581_v36 = vadd.f32 %v1235_v6, %v580_v34 }
 0x3bc   :  { %596 = vst [vmem:[#allocation9 + $0x20] sm:$0xff] %v581_v36 }
 0x3bf   :  { %v414_v45 = vpop.f32.mrf.mxu3 }
 0x3c0   :  { %v415_v46 = vadd.f32 %v414_v45, %v395_v44 }
 0x3c2   :  { %683 = vtanh.f32 %v415_v46 }
 0x3c8   :  { %v684_v47 = vpop.eup %683 }
 0x3c9   :  { %464 = vmatmul.f32.vlgmr.msra.gmra.mxu1 %v684_v47  ;;  %582 = vmatmul.f32.gmra.mxu0 %v684_v47 }
 0x446   :  { %v465_v49 = vpop.f32.mrf.mxu1  ;;  %v583_v50 = vpop.f32.mrf.mxu0 }
 0x447   :  { %v466_v51 = vadd.f32 %v465_v49, %v446_v48  ;;  %v584_v52 = vadd.f32 %v1235_v6, %v583_v50 }
 0x449   :  { %685 = vtanh.f32 %v466_v51  ;;  %597 = vst [vmem:[#allocation9 + $0x28] sm:$0xff] %v584_v52 }
 0x44f   :  { %v686_v53 = vpop.eup %685 }
 0x450   :  { %515 = vmatmul.f32.vlgmr.msrb.gmra.mxu3 %v686_v53  ;;  %585 = vmatmul.f32.gmra.mxu0 %v686_v53 }
 0x4cd   :  { %v586_v54 = vpop.f32.mrf.mxu0 }
 0x4ce   :  { %v587_v55 = vadd.f32 %v1235_v6, %v586_v54 }
 0x4d0   :  { %598 = vst [vmem:[#allocation9 + $0x30] sm:$0xff] %v587_v55 }
 0x4d3   :  { %v516_v58 = vpop.f32.mrf.mxu3 }
 0x4d4   :  { %v517_v59 = vadd.f32 %v516_v58, %v497_v57 }
 0x4d6   :  { %687 = vtanh.f32 %v517_v59 }
 0x4dc   :  { %v688_v60 = vpop.eup %687 }
 0x4dd   :  { %522 = vst [vmem:[#allocation10] sm:$0xff] %v688_v60  ;;  %588 = vmatmul.f32.gmra.mxu0 %v688_v60 }
 0x4de   :  { %623 = dma.vmem_to_hbm [thread:$0]  %s619_s18, 128, %s621_s19, [#allocation11]  }
 0x55a   :  { %v589_v61 = vpop.f32.mrf.mxu0 }
 0x55b   :  { %v590_v62 = vadd.f32 %v1235_v6, %v589_v61 }
 0x55d   :  { %599 = vst [vmem:[#allocation9 + $0x38] sm:$0xff] %v590_v62 }
 0x55e   :  { %612 = dma.vmem_to_hbm [thread:$0]  %s605_s20, 1024, %s607_s23, [#allocation5], %s818_s13, %s818_s13, %s819_s14  }
 0x55f   :  { %813 = dma.done.wait [#allocation5], 1024  }
 0x560   :  { %814 = vsyncadd [#allocation5], 4294966272 }
 0x561   :  { %815 = dma.done.wait [#allocation11], 128  }
 0x562   :  { %816 = vsyncadd [#allocation11], 4294967168 }
 0x563   :  { %632 = vsyncpa [#allocation4], 1 }
 0x564   :  { %633 = vsyncpa [#allocation7], 1 }
 0x565   :  { %634 = vsyncpa [#allocation5], 1 }
 0x566   :  { %635 = vsyncpa [#allocation11], 1 }

</bundles_post_ra>
